<compile_context>
chip_gen: v6e
topology: v6e:2x2x1
jax: 0.10.0
libtpu: 0.0.40
codegen_flags: <defaults>
</compile_context>

<pallas_src>
import functools

import jax
import jax.numpy as jnp
from jax import lax
from jax.experimental import pallas as pl
from jax.experimental.pallas import tpu as pltpu

NUM_OPS = 6


def _shift_rows(a, s, fill):
    """out[h, :] = a[h - s, :] for in-range rows, else `fill`.  s in {-1, +1}."""
    H = a.shape[0]
    if s > 0:
        ap = jnp.pad(a, ((s, 0), (0, 0)), constant_values=fill)
        return ap[:H]
    ap = jnp.pad(a, ((0, -s), (0, 0)), constant_values=fill)
    return ap[-s:]


def _shift_lanes(a, s, fill):
    """out[:, l] = a[:, l - s] for in-range lanes, else `fill`.  s = +/- C (one W step)."""
    L = a.shape[1]
    if s > 0:
        ap = jnp.pad(a, ((0, 0), (s, 0)), constant_values=fill)
        return ap[:, :L]
    ap = jnp.pad(a, ((0, 0), (0, -s)), constant_values=fill)
    return ap[:, -s:]


def _inv_small(c):
    """Exact reciprocal for window counts in {1, 2, 3} (selects; no divide, no EUP approx)."""
    return jnp.where(c == 2.0, 0.5, jnp.where(c == 1.0, 1.0, 1.0 / 3.0))


def mixed_op_kernel(x_ref, m_ref, t_ref, al_ref, o_ref, *, w, c):
    # x_ref : VMEM (1, H, W*C) f32   -- one NHWC image, W and C merged into the lane axis
    # m_ref : VMEM (3, W*C, W*C) f32 -- block-tridiagonal conv matrices (dx + channel mix;
    #                                   3x3 conv + skip + 1x1 + alphas folded in), one per dy
    # t_ref : VMEM (W*C, W*C) f32    -- 3-wide column window-sum matrix (identity channels)
    # al_ref: SMEM (2,) f32          -- [alpha_avg, alpha_max]
    # o_ref : VMEM (1, H, W*C) f32
    x = x_ref[0]
    h_sz, wc = x.shape
    f32 = jnp.float32

    # Row (H) shifts with zero fill — shared by the conv LHS, avg pool, and (re-masked) max pool.
    xm = _shift_rows(x, +1, 0.0)        # xm[h] = x[h-1]; row 0 zero-filled
    xp = _shift_rows(x, -1, 0.0)        # xp[h] = x[h+1]; row H-1 zero-filled

    # ---- conv path (3x3 + folded skip/1x1/alphas): three lane-dense MXU dots -----------
    acc = jnp.dot(xm, m_ref[0], preferred_element_type=f32)
    acc = acc + jnp.dot(x, m_ref[1], preferred_element_type=f32)
    acc = acc + jnp.dot(xp, m_ref[2], preferred_element_type=f32)

    # ---- avg pool (count_include_pad=False): window sum on the MXU, analytic 1/count ----
    row_sum = xm + x + xp
    win_sum = jnp.dot(row_sum, t_ref[...], preferred_element_type=f32)

    ri = lax.broadcasted_iota(jnp.int32, (h_sz, wc), 0)
    li = lax.broadcasted_iota(jnp.int32, (h_sz, wc), 1)
    top = ri == 0
    bot = ri == h_sz - 1
    left = li < c
    right = li >= (w - 1) * c
    cnt_r = 3.0 - top.astype(f32) - bot.astype(f32)
    cnt_c = 3.0 - left.astype(f32) - right.astype(f32)
    scale_avg = al_ref[0] * (_inv_small(cnt_r) * _inv_small(cnt_c))

    # ---- max pool: re-mask the shared row shifts to -inf, then two lane shifts ----------
    neg_inf = -jnp.inf
    row_max = jnp.maximum(x, jnp.maximum(jnp.where(top, neg_inf, xm),
                                         jnp.where(bot, neg_inf, xp)))
    win_max = jnp.maximum(row_max,
                          jnp.maximum(_shift_lanes(row_max, c, neg_inf),
                                      _shift_lanes(row_max, -c, neg_inf)))

    acc = acc + win_sum * scale_avg + al_ref[1] * win_max
    o_ref[0] = acc.astype(o_ref.dtype)


def mixed_op_nhwc(x, weights, w1, w3):
    """Core NHWC entry point (no layout transposes).
    x: [N, H, W, C]; weights: [NUM_OPS]; w1: [C, C]; w3: [3, 3, C, C] (HWIO)."""
    f32 = jnp.float32
    x = x.astype(f32)
    N, H, W, C = x.shape
    WC = W * C
    weights = weights.astype(f32)

    # Fold skip(identity) + 1x1 conv + alphas 1/4/5 into one effective 3x3 kernel (tiny prep).
    w_eff = weights[5] * w3.astype(f32)
    center = (w_eff[1, 1] + weights[4] * w1.astype(f32)
              + weights[1] * jnp.eye(C, dtype=f32))
    w_eff = w_eff.at[1, 1].set(center)

    # Lane-space block-tridiagonal matrices: M[dy][w_in*C+ci, w_out*C+co] =
    #   w_eff[dy, (w_in - w_out)+1, ci, co] for |w_in - w_out| <= 1, else 0.
    # T is the same band structure with identity channel mixing (3-wide column sum).
    wi = jnp.arange(W)
    sel = ((wi[:, None] - wi[None, :])[:, :, None]
           == jnp.arange(-1, 2)[None, None, :]).astype(f32)              # (W_in, W_out, 3)
    m_mats = jnp.einsum("pqd,edij->epiqj", sel, w_eff).reshape(3, WC, WC)
    t_mat = jnp.einsum("pqd,ij->piqj", sel, jnp.eye(C, dtype=f32)).reshape(WC, WC)

    alphas = jnp.stack([weights[2], weights[3]])                          # [avg, max] -> SMEM

    # Free reshape: merges the two minor dims of contiguous NHWC into a lane-dense axis.
    x2 = x.reshape(N, H, WC)

    kernel = functools.partial(mixed_op_kernel, w=W, c=C)
    out = pl.pallas_call(
        kernel,
        out_shape=jax.ShapeDtypeStruct((N, H, WC), f32),
        grid=(N,),
        in_specs=[
            pl.BlockSpec((1, H, WC), lambda n: (n, 0, 0)),
            pl.BlockSpec((3, WC, WC), lambda n: (0, 0, 0)),   # resident across steps
            pl.BlockSpec((WC, WC), lambda n: (0, 0)),         # resident across steps
            pl.BlockSpec(memory_space=pltpu.MemorySpace.SMEM),
        ],
        out_specs=pl.BlockSpec((1, H, WC), lambda n: (n, 0, 0)),
        compiler_params=pltpu.CompilerParams(
            dimension_semantics=("parallel",),        # v7x: shard the batch over 2 TCs
            vmem_limit_bytes=48 * 1024 * 1024),       # within v7x's 64 MiB physical VMEM
    )(x2, m_mats, t_mat, alphas)
    return out.reshape(N, H, W, C)


def mixed_op(x_nchw, weights, w1, w3):
    """PyTorch-parity NCHW adapter. In an NHWC end-to-end model, call mixed_op_nhwc
    directly and skip both transposes (each round-trips the tensor through HBM)."""
    x_nhwc = jnp.transpose(x_nchw, (0, 2, 3, 1))
    out = mixed_op_nhwc(x_nhwc, weights, w1, w3)
    return jnp.transpose(out, (0, 3, 1, 2))


def mixed_op_reference(x_nchw, weights, w1, w3):
    """Independent pure-JAX reference (NHWC internally)."""
    x = jnp.transpose(x_nchw, (0, 2, 3, 1)).astype(jnp.float32)
    N, H, W, C = x.shape
    dn = lax.conv_dimension_numbers(x.shape, (3, 3, C, C), ("NHWC", "HWIO", "NHWC"))

    ident = x
    conv1 = lax.conv_general_dilated(
        x, w1.reshape(1, 1, C, C), (1, 1), "SAME", dimension_numbers=dn)
    conv3 = lax.conv_general_dilated(
        x, w3, (1, 1), "SAME", dimension_numbers=dn)
    max_pool = lax.reduce_window(
        x, -jnp.inf, lax.max, (1, 3, 3, 1), (1, 1, 1, 1), "SAME")
    sum_pool = lax.reduce_window(
        x, 0.0, lax.add, (1, 3, 3, 1), (1, 1, 1, 1), "SAME")
    cnt = lax.reduce_window(
        jnp.ones_like(x), 0.0, lax.add, (1, 3, 3, 1), (1, 1, 1, 1), "SAME")
    avg_pool = sum_pool / cnt

    out = (weights[0] * jnp.zeros_like(x)
           + weights[1] * ident
           + weights[2] * avg_pool
           + weights[3] * max_pool
           + weights[4] * conv1
           + weights[5] * conv3)
    return jnp.transpose(out, (0, 3, 1, 2))


if __name__ == "__main__":
    key = jax.random.PRNGKey(0)
    kx, kw1, kw3, ka = jax.random.split(key, 4)

    N, C, H, W = 2, 4, 16, 16   # NCHW, matching the PyTorch module's interface

    x = jax.random.normal(kx, (N, C, H, W), dtype=jnp.float32)
    w1 = jax.random.normal(kw1, (C, C), dtype=jnp.float32) * 0.1
    w3 = jax.random.normal(kw3, (3, 3, C, C), dtype=jnp.float32) * 0.1
    # Architecture weights (softmax over alphas, as in DARTS).
    weights = jax.nn.softmax(jax.random.normal(ka, (NUM_OPS,), dtype=jnp.float32))

    out = jax.block_until_ready(mixed_op(x, weights, w1, w3))
    ref = jax.block_until_ready(mixed_op_reference(x, weights, w1, w3))

    assert out.shape == (N, C, H, W)
    max_err = float(jnp.max(jnp.abs(out - ref)))
    assert jnp.allclose(out, ref, atol=2e-4, rtol=2e-4), max_err
    print("KERNEL_OK")
</pallas_src>

<mosaic_0001>
module attributes {stable_mosaic.version = 11 : i64} {
  func.func @mixed_op_kernel(%arg0: i32, %arg1: memref<1x16x64xf32, #tpu.memory_space<vmem>>, %arg2: memref<3x64x64xf32, #tpu.memory_space<vmem>>, %arg3: memref<64x64xf32, #tpu.memory_space<vmem>>, %arg4: memref<2xf32, #tpu.memory_space<smem>>, %arg5: memref<1x16x64xf32, #tpu.memory_space<vmem>>) attributes {dimension_semantics = [#tpu.dimension_semantics<parallel>], iteration_bounds = array<i64: 2>, scalar_prefetch = 0 : i64, scratch_operands = 0 : i64, tpu.core_type = #tpu.core_type<tc>, window_params = [{transform_indices = @transform_0, window_bounds = array<i64: 1, 16, 64>}, {pipeline_mode = #tpu.pipeline_mode<synchronous>, transform_indices = @transform_1, window_bounds = array<i64: 3, 64, 64>}, {pipeline_mode = #tpu.pipeline_mode<synchronous>, transform_indices = @transform_2, window_bounds = array<i64: 64, 64>}, {transform_indices = @transform_3, window_bounds = array<i64: 2>}, {transform_indices = @transform_4, window_bounds = array<i64: 1, 16, 64>}]} {
    %c0 = arith.constant 0 : index
    %c0_0 = arith.constant 0 : index
    %c0_1 = arith.constant 0 : index
    %0 = vector.load %arg1[%c0, %c0_0, %c0_1] : memref<1x16x64xf32, #tpu.memory_space<vmem>>, vector<1x16x64xf32>
    %1 = vector.shape_cast %0 : vector<1x16x64xf32> to vector<16x64xf32>
    %cst = arith.constant 0.000000e+00 : f32
    %2 = vector.broadcast %cst : f32 to vector<1x64xf32>
    %3 = tpu.concatenate %2, %1 in 0 : vector<1x64xf32>, vector<16x64xf32> -> vector<17x64xf32>
    %4 = vector.extract_strided_slice %3 {offsets = [0, 0], sizes = [16, 64], strides = [1, 1]} : vector<17x64xf32> to vector<16x64xf32>
    %cst_2 = arith.constant 0.000000e+00 : f32
    %5 = vector.broadcast %cst_2 : f32 to vector<1x64xf32>
    %6 = tpu.concatenate %1, %5 in 0 : vector<16x64xf32>, vector<1x64xf32> -> vector<17x64xf32>
    %7 = vector.extract_strided_slice %6 {offsets = [1, 0], sizes = [16, 64], strides = [1, 1]} : vector<17x64xf32> to vector<16x64xf32>
    %c0_3 = arith.constant 0 : index
    %c0_4 = arith.constant 0 : index
    %c0_5 = arith.constant 0 : index
    %8 = vector.load %arg2[%c0_3, %c0_4, %c0_5] : memref<3x64x64xf32, #tpu.memory_space<vmem>>, vector<1x64x64xf32>
    %9 = vector.shape_cast %8 : vector<1x64x64xf32> to vector<64x64xf32>
    %cst_6 = arith.constant dense<0.000000e+00> : vector<16x64xf32>
    %10 = tpu.matmul %4, %9, %cst_6 {dimension_numbers = #tpu.dot_dimension_numbers<[1], [0], [0], [1], [0, 0, 1, 1], [], []>} : vector<16x64xf32>, vector<64x64xf32>, vector<16x64xf32> -> vector<16x64xf32>
    %c1 = arith.constant 1 : index
    %c0_7 = arith.constant 0 : index
    %c0_8 = arith.constant 0 : index
    %11 = vector.load %arg2[%c1, %c0_7, %c0_8] : memref<3x64x64xf32, #tpu.memory_space<vmem>>, vector<1x64x64xf32>
    %12 = vector.shape_cast %11 : vector<1x64x64xf32> to vector<64x64xf32>
    %cst_9 = arith.constant dense<0.000000e+00> : vector<16x64xf32>
    %13 = tpu.matmul %1, %12, %cst_9 {dimension_numbers = #tpu.dot_dimension_numbers<[1], [0], [0], [1], [0, 0, 1, 1], [], []>} : vector<16x64xf32>, vector<64x64xf32>, vector<16x64xf32> -> vector<16x64xf32>
    %14 = arith.addf %10, %13 : vector<16x64xf32>
    %c2 = arith.constant 2 : index
    %c0_10 = arith.constant 0 : index
    %c0_11 = arith.constant 0 : index
    %15 = vector.load %arg2[%c2, %c0_10, %c0_11] : memref<3x64x64xf32, #tpu.memory_space<vmem>>, vector<1x64x64xf32>
    %16 = vector.shape_cast %15 : vector<1x64x64xf32> to vector<64x64xf32>
    %cst_12 = arith.constant dense<0.000000e+00> : vector<16x64xf32>
    %17 = tpu.matmul %7, %16, %cst_12 {dimension_numbers = #tpu.dot_dimension_numbers<[1], [0], [0], [1], [0, 0, 1, 1], [], []>} : vector<16x64xf32>, vector<64x64xf32>, vector<16x64xf32> -> vector<16x64xf32>
    %18 = arith.addf %14, %17 : vector<16x64xf32>
    %19 = arith.addf %4, %1 : vector<16x64xf32>
    %20 = arith.addf %19, %7 : vector<16x64xf32>
    %c0_13 = arith.constant 0 : index
    %c0_14 = arith.constant 0 : index
    %21 = vector.load %arg3[%c0_13, %c0_14] : memref<64x64xf32, #tpu.memory_space<vmem>>, vector<64x64xf32>
    %cst_15 = arith.constant dense<0.000000e+00> : vector<16x64xf32>
    %22 = tpu.matmul %20, %21, %cst_15 {dimension_numbers = #tpu.dot_dimension_numbers<[1], [0], [0], [1], [0, 0, 1, 1], [], []>} : vector<16x64xf32>, vector<64x64xf32>, vector<16x64xf32> -> vector<16x64xf32>
    %23 = tpu.iota {dimensions = array<i32: 0>} : vector<16x64xi32>
    %24 = tpu.iota {dimensions = array<i32: 1>} : vector<16x64xi32>
    %c0_i32 = arith.constant 0 : i32
    %25 = vector.broadcast %c0_i32 : i32 to vector<16x64xi32>
    %26 = arith.cmpi eq, %23, %25 : vector<16x64xi32>
    %c15_i32 = arith.constant 15 : i32
    %27 = vector.broadcast %c15_i32 : i32 to vector<16x64xi32>
    %28 = arith.cmpi eq, %23, %27 : vector<16x64xi32>
    %c4_i32 = arith.constant 4 : i32
    %29 = vector.broadcast %c4_i32 : i32 to vector<16x64xi32>
    %30 = arith.cmpi slt, %24, %29 : vector<16x64xi32>
    %c60_i32 = arith.constant 60 : i32
    %31 = vector.broadcast %c60_i32 : i32 to vector<16x64xi32>
    %32 = arith.cmpi sge, %24, %31 : vector<16x64xi32>
    %33 = arith.extui %26 : vector<16x64xi1> to vector<16x64xi32>
    %34 = arith.sitofp %33 : vector<16x64xi32> to vector<16x64xf32>
    %cst_16 = arith.constant 3.000000e+00 : f32
    %35 = vector.broadcast %cst_16 : f32 to vector<16x64xf32>
    %36 = arith.subf %35, %34 : vector<16x64xf32>
    %37 = arith.extui %28 : vector<16x64xi1> to vector<16x64xi32>
    %38 = arith.sitofp %37 : vector<16x64xi32> to vector<16x64xf32>
    %39 = arith.subf %36, %38 : vector<16x64xf32>
    %40 = arith.extui %30 : vector<16x64xi1> to vector<16x64xi32>
    %41 = arith.sitofp %40 : vector<16x64xi32> to vector<16x64xf32>
    %cst_17 = arith.constant 3.000000e+00 : f32
    %42 = vector.broadcast %cst_17 : f32 to vector<16x64xf32>
    %43 = arith.subf %42, %41 : vector<16x64xf32>
    %44 = arith.extui %32 : vector<16x64xi1> to vector<16x64xi32>
    %45 = arith.sitofp %44 : vector<16x64xi32> to vector<16x64xf32>
    %46 = arith.subf %43, %45 : vector<16x64xf32>
    %c0_18 = arith.constant 0 : index
    %47 = memref.load %arg4[%c0_18] : memref<2xf32, #tpu.memory_space<smem>>
    %cst_19 = arith.constant 2.000000e+00 : f32
    %48 = vector.broadcast %cst_19 : f32 to vector<16x64xf32>
    %49 = arith.cmpf oeq, %39, %48 : vector<16x64xf32>
    %cst_20 = arith.constant 1.000000e+00 : f32
    %50 = vector.broadcast %cst_20 : f32 to vector<16x64xf32>
    %51 = arith.cmpf oeq, %39, %50 : vector<16x64xf32>
    %cst_21 = arith.constant 1.000000e+00 : f32
    %cst_22 = arith.constant 0.333333343 : f32
    %52 = vector.broadcast %cst_21 : f32 to vector<16x64xf32>
    %53 = vector.broadcast %cst_22 : f32 to vector<16x64xf32>
    %54 = arith.select %51, %52, %53 : vector<16x64xi1>, vector<16x64xf32>
    %cst_23 = arith.constant 5.000000e-01 : f32
    %55 = vector.broadcast %cst_23 : f32 to vector<16x64xf32>
    %56 = arith.select %49, %55, %54 : vector<16x64xi1>, vector<16x64xf32>
    %cst_24 = arith.constant 2.000000e+00 : f32
    %57 = vector.broadcast %cst_24 : f32 to vector<16x64xf32>
    %58 = arith.cmpf oeq, %46, %57 : vector<16x64xf32>
    %cst_25 = arith.constant 1.000000e+00 : f32
    %59 = vector.broadcast %cst_25 : f32 to vector<16x64xf32>
    %60 = arith.cmpf oeq, %46, %59 : vector<16x64xf32>
    %cst_26 = arith.constant 1.000000e+00 : f32
    %cst_27 = arith.constant 0.333333343 : f32
    %61 = vector.broadcast %cst_26 : f32 to vector<16x64xf32>
    %62 = vector.broadcast %cst_27 : f32 to vector<16x64xf32>
    %63 = arith.select %60, %61, %62 : vector<16x64xi1>, vector<16x64xf32>
    %cst_28 = arith.constant 5.000000e-01 : f32
    %64 = vector.broadcast %cst_28 : f32 to vector<16x64xf32>
    %65 = arith.select %58, %64, %63 : vector<16x64xi1>, vector<16x64xf32>
    %66 = arith.mulf %56, %65 : vector<16x64xf32>
    %67 = vector.broadcast %47 : f32 to vector<16x64xf32>
    %68 = arith.mulf %67, %66 : vector<16x64xf32>
    %cst_29 = arith.constant 0xFF800000 : f32
    %69 = vector.broadcast %cst_29 : f32 to vector<16x64xf32>
    %70 = arith.select %26, %69, %4 : vector<16x64xi1>, vector<16x64xf32>
    %cst_30 = arith.constant 0xFF800000 : f32
    %71 = vector.broadcast %cst_30 : f32 to vector<16x64xf32>
    %72 = arith.select %28, %71, %7 : vector<16x64xi1>, vector<16x64xf32>
    %73 = arith.maximumf %70, %72 : vector<16x64xf32>
    %74 = arith.maximumf %1, %73 : vector<16x64xf32>
    %cst_31 = arith.constant 0xFF800000 : f32
    %75 = vector.broadcast %cst_31 : f32 to vector<16x4xf32>
    %76 = tpu.concatenate %75, %74 in 1 : vector<16x4xf32>, vector<16x64xf32> -> vector<16x68xf32>
    %77 = vector.extract_strided_slice %76 {offsets = [0, 0], sizes = [16, 64], strides = [1, 1]} : vector<16x68xf32> to vector<16x64xf32>
    %cst_32 = arith.constant 0xFF800000 : f32
    %78 = vector.broadcast %cst_32 : f32 to vector<16x4xf32>
    %79 = tpu.concatenate %74, %78 in 1 : vector<16x64xf32>, vector<16x4xf32> -> vector<16x68xf32>
    %80 = vector.extract_strided_slice %79 {offsets = [0, 4], sizes = [16, 64], strides = [1, 1]} : vector<16x68xf32> to vector<16x64xf32>
    %81 = arith.maximumf %77, %80 : vector<16x64xf32>
    %82 = arith.maximumf %74, %81 : vector<16x64xf32>
    %83 = arith.mulf %22, %68 : vector<16x64xf32>
    %84 = arith.addf %18, %83 : vector<16x64xf32>
    %c1_33 = arith.constant 1 : index
    %85 = memref.load %arg4[%c1_33] : memref<2xf32, #tpu.memory_space<smem>>
    %86 = vector.broadcast %85 : f32 to vector<16x64xf32>
    %87 = arith.mulf %86, %82 : vector<16x64xf32>
    %88 = arith.addf %84, %87 : vector<16x64xf32>
    %c0_34 = arith.constant 0 : index
    %c0_35 = arith.constant 0 : index
    %c0_36 = arith.constant 0 : index
    %89 = vector.load %arg5[%c0_34, %c0_35, %c0_36] : memref<1x16x64xf32, #tpu.memory_space<vmem>>, vector<1x16x64xf32>
    %90 = vector.shape_cast %89 : vector<1x16x64xf32> to vector<16x64xf32>
    %91 = vector.shape_cast %88 : vector<16x64xf32> to vector<1x16x64xf32>
    tpu.vector_store %arg5[%c0_34, %c0_35, %c0_36], %91 {strides = array<i32>} : memref<1x16x64xf32, #tpu.memory_space<vmem>>, vector<1x16x64xf32>,
    return
  }
  func.func @transform_0(%arg0: i32) -> (i32, i32, i32) {
    %c0_i32 = arith.constant 0 : i32
    %c0_i32_0 = arith.constant 0 : i32
    %c0_i32_1 = arith.constant 0 : i32
    return %arg0, %c0_i32, %c0_i32_0 : i32, i32, i32
  }
  func.func @transform_1(%arg0: i32) -> (i32, i32, i32) {
    %c0_i32 = arith.constant 0 : i32
    %c0_i32_0 = arith.constant 0 : i32
    %c0_i32_1 = arith.constant 0 : i32
    %c0_i32_2 = arith.constant 0 : i32
    return %c0_i32, %c0_i32_0, %c0_i32_1 : i32, i32, i32
  }
  func.func @transform_2(%arg0: i32) -> (i32, i32) {
    %c0_i32 = arith.constant 0 : i32
    %c0_i32_0 = arith.constant 0 : i32
    %c0_i32_1 = arith.constant 0 : i32
    return %c0_i32, %c0_i32_0 : i32, i32
  }
  func.func @transform_3(%arg0: i32) -> i32 {
    %c0_i32 = arith.constant 0 : i32
    %c0_i32_0 = arith.constant 0 : i32
    return %c0_i32 : i32
  }
  func.func @transform_4(%arg0: i32) -> (i32, i32, i32) {
    %c0_i32 = arith.constant 0 : i32
    %c0_i32_0 = arith.constant 0 : i32
    %c0_i32_1 = arith.constant 0 : i32
    return %arg0, %c0_i32, %c0_i32_0 : i32, i32, i32
  }
}

</mosaic_0001>

<bundles_post_ra>
// kernel: tpu_custom_call.1
= control target key start
LH: loop header
LB: loop body
LE: loop exit
PB: predicated region body
PF: predicated region fallthrough
CT: control target
= control target key end

     0   :  { %9 = vsyncpa [#allocation3], 0  ;;  %s1579_s0 = inlined_call_operand.hbm [shape: f32[2,16,64], index: 0, kind: input, shape index: {}]   ;;  %s1580_s1 = inlined_call_operand.hbm [shape: f32[3,64,64], index: 1, kind: input, shape index: {}]   ;;  %s1581_s2 = inlined_call_operand.hbm [shape: f32[64,64], index: 2, kind: input, shape index: {}]   ;;  %s1582_s3 = inlined_call_operand.vmem [shape: f32[2], index: 3, kind: input, shape index: {}]   ;;  %s1583_s4 = inlined_call_operand.hbm [shape: f32[2,16,64], index: 4, kind: output, shape index: {}]  }
   0x1   :  { %11 = vsyncpa [#allocation3 + $0x1], 0 }
   0x2   :  { %12 = vsyncpa [#allocation7], 0 }
   0x3   :  { %13 = vsyncpa [#allocation5], 0 }
   0x4   :  { %14 = vsyncpa [#allocation4], 0 }
   0x5   :  { %16 = vsyncpa [#allocation4 + $0x1], 0  ;;  %s1292_s15 = smov 0   ;;  %s1294_s16 = smov 0  }
   0x6   :  { %s1296_s17 = smov 0   ;;  %s1298_s18 = smov 0  }
   0x7 LB: > { %s1313_s19 = sadd.s32 4294967295, %s1252_s18   ;;  %s849_s20 = sadd.s32 4294967294, %s1252_s18   ;;  %s1252_s18 = sphi %s1298_s18, %s1606_s18   ;;  %s1248_s17 = sphi %s1296_s17, %s1605_s17   ;;  %s1244_s16 = sphi %s1294_s16, %s1604_s16   ;;  %s1240_s15 = sphi %s1292_s15, %s1603_s15  }
   0x8   : > { %p42_p0 = scmp.ne.s32.totalorder %s1244_s16, %s1240_s15  ;;  %p1584_p1 = scmp.eq.s32.totalorder %s1313_s19, 0 }
   0x9   : > { %p129_p2 = scmp.eq.s32.totalorder %s1313_s19, 1  ;;  %p135_p3 = scmp.eq.s32.totalorder %s849_s20, 1 }
   0xa   : > { %p1322_p4 = por %p1584_p1, %p42_p0  ;;  %p850_p5 = scmp.ge.s32.totalorder %s1252_s18, 1 }
   0xb   : > { %p1327_p6 = por %p135_p3, %p42_p0  ;;  %p142_p7 = scmp.lt.s32.totalorder %s1252_s18, 3 }
   0xc   : > { %s1588_s21 = scalar_select %p1322_p4, 1, 0 }
   0xd   : > { %s1589_s22 = scalar_select %p1327_p6, 1, 0 }
   0xe   : > { %p1332_p8 = pnand %p850_p5, %p142_p7  ;;  %s1254_s24 = smov [#allocation6]  }
   0xf   : > { %s154_s25 = sshll.u32 %s1254_s24, 4  ;;  %s1255_s27 = smov [#allocation8]   ;;  %s155_s25 = int_to_ptr.vmem [resolvable:$true] %s154_s25 }
  0x10   : > { %s1590_s23 = scalar_select %p1332_p8, 1, 0 }
  0x11   : > { %p1016_p9 = pneg %p1332_p8  ;;  %s167_s28 = sshll.u32 %s1255_s27, 4  ;;  %s168_s28 = int_to_ptr.vmem [resolvable:$true] %s167_s28 }
  0x12   : > { %s181_s5 = sshll.u32 %s1582_s3, 4  ;;  %s1096_s6 = scalar_lea.vmem %s155_s25, 3072  ;;  %s1348_s5 = int_to_ptr.vmem [resolvable:$true] %s181_s5 }
  0x13   : > { %p1341_p11 = pnand %p1016_p9, %p1584_p1  ;;  %p1097_p13 = scmp.ne.s32.totalorder %s155_s25, %s1096_s6 }
  0x14   : > { %p1104_p5 = scmp.lt.s32.totalorder %s155_s25, %s155_s25  ;;  %p1105_p7 = scmp.lt.s32.totalorder %s1096_s6, %s1096_s6 }
  0x15   : > { %p1087_p12 = pneg %p1341_p11 }
  0x16   : > { %p1106_p9 = por %p1105_p7, %p1104_p5 }
  0x17   : > { %p1099_p0 = pnand %p1097_p13, %p1087_p12 }
  0x19   : > { %p1100_p3 = pneg %p1099_p0 }
  0x1b   : > { %p1107_p10 = pnand %p1106_p9, %p1100_p3 }
  0x1d   : > { %1110 = shalt.err (!%p1107_p10)
}
  0x1e   : > { %s1256_s7 = smov 128   ;;  %s1257_s8 = smov 8  }
  0x1f   : > { %1019 = dma.hbm_to_vmem [thread:$0]  (!%p1341_p11), %s1580_s1, 3072, %s155_s25, [#allocation7], %s1256_s7, %s1256_s7, %s1257_s8  }
  0x20   : > { %s1122_s11 = scalar_lea.vmem %s168_s28, 1024  ;;  %p1130_p3 = scmp.lt.s32.totalorder %s168_s28, %s168_s28 }
  0x21   : > { %p1123_p13 = scmp.ne.s32.totalorder %s168_s28, %s1122_s11  ;;  %p1131_p10 = scmp.lt.s32.totalorder %s1122_s11, %s1122_s11 }
  0x23   : > { %p1125_p0 = pnand %p1123_p13, %p1087_p12  ;;  %p1132_p7 = por %p1131_p10, %p1130_p3 }
  0x25   : > { %p1126_p5 = pneg %p1125_p0 }
  0x27   : > { %p1133_p9 = pnand %p1132_p7, %p1126_p5 }
  0x29   : > { %1136 = shalt.err (!%p1133_p9)
}
  0x2a   : > { %1022 = dma.hbm_to_vmem [thread:$0]  (!%p1341_p11), %s1581_s2, 1024, %s168_s28, [#allocation7], %s1256_s7, %s1256_s7, %s1257_s8  }
  0x2b   : > { %s1137_s14 = scalar_lea.vmem %s1348_s5, 16  ;;  %p1145_p3 = scmp.lt.s32.totalorder %s1348_s5, %s1348_s5 }
  0x2c   : > { %p1138_p13 = scmp.ne.s32.totalorder %s1348_s5, %s1137_s14  ;;  %p1146_p10 = scmp.lt.s32.totalorder %s1137_s14, %s1137_s14 }
  0x2e   : > { %p1140_p0 = pnand %p1138_p13, %p1087_p12  ;;  %p1147_p7 = por %p1146_p10, %p1145_p3 }
  0x30   : > { %p1141_p5 = pneg %p1140_p0 }
  0x32   : > { %p1148_p9 = pnand %p1147_p7, %p1141_p5 }
  0x34   : > { %1151 = shalt.err (!%p1148_p9)
}
  0x35   : > { %s1258_s20 = smov [#allocation9]   ;;  %s1385_s24 = sadd.s32 1, %s1252_s18  }
  0x36   : > { %1025 = dma.vmem_to_smem (!%p1341_p11), %s1348_s5, 16, %s1258_s20, [#allocation5]  }
  0x37   : > { %s26_s25 = ssub.s32 %s1252_s18, %s1385_s24  ;;  %s29_s27 = sadd.s32 1, %s1248_s17 }
  0x38   : > { %p27_p12 = scmp.eq.s32.totalorder %s26_s25, 0  ;;  %p36_p13 = scmp.ne.s32.totalorder %s1248_s17, %s1244_s16 }
  0x39   : > { %p37_p0 = scmp.eq.s32.totalorder %s1252_s18, 0  ;;  %p1037_p5 = scmp.lt.s32.totalorder %s1252_s18, 2 }
  0x3a   : > { %s1395_s26 = scalar_select %p27_p12, %s1248_s17, %s29_s27  }
  0x3b   : > { %p38_p3 = por %p37_p0, %p36_p13  ;;  %p1399_p10 = por %p129_p2, %p36_p13 }
  0x3c   : > { %s192_s29 = sand.u32 1, %s1248_s17   ;;  %s882_s30 = sshll.u32 %s1252_s18, 8 }
  0x3d   : > { %s1592_s28 = scalar_select %p1399_p10, 1, 0 }
  0x3e   : > { %s855_s5 = sshll.u32 %s192_s29, 4  ;;  %s1408_s10 = scalar_lea.hbm %s1579_s0, %s882_s30 }
  0x3f   : > { %s196_s11 = scalar_lea.vmem [#allocation2], %s855_s5  ;;  %p1410_p11 = pnand %p1037_p5, %p38_p3 }
  0x40   : > { %s203_s12 = sshll.u32 %s196_s11, 4  ;;  %s1416_s14 = scalar_lea.sflag [#allocation3], %s192_s29  ;;  %s1414_s12 = int_to_ptr.vmem [resolvable:$true] %s203_s12 }
  0x41   : > { %s1152_s20 = scalar_lea.hbm %s1408_s10, 256  ;;  %p1154_p7 = pneg %p1410_p11 }
  0x42   : > { %p1153_p2 = scmp.ne.s32.totalorder %s1408_s10, %s1152_s20  ;;  %s1157_s30 = scalar_lea.hbm %s1579_s0, 512 }
  0x43   : > { %p1158_p13 = scmp.lt.s32.totalorder %s1408_s10, %s1579_s0  ;;  %p1159_p0 = scmp.lt.s32.totalorder %s1157_s30, %s1152_s20 }
  0x44   : > { %p1155_p9 = pnand %p1154_p7, %p1153_p2 }
  0x45   : > { %p1160_p5 = por %p1159_p0, %p1158_p13 }
  0x46   : > { %p1156_p12 = pneg %p1155_p9 }
  0x48   : > { %p1161_p3 = pnand %p1160_p5, %p1156_p12 }
  0x4a   : > { %1164 = shalt.err (!%p1161_p3)
}
  0x4b   : > { %s1165_s29 = scalar_lea.vmem %s1414_s12, 256  ;;  %s1259_s9 = smov [#allocation2]  }
  0x4c   : > { %p1166_p1 = scmp.ne.s32.totalorder %s1414_s12, %s1165_s29  ;;  %s1170_s11 = sshll.u32 %s1259_s9, 4  ;;  %s1171_s11 = int_to_ptr.vmem [resolvable:$false] %s1170_s11 }
  0x4d   : > { %s1172_s25 = scalar_lea.vmem %s1171_s11, 512  ;;  %p1173_p9 = scmp.lt.s32.totalorder %s1414_s12, %s1171_s11 }
  0x4e   : > { %p1168_p6 = pnand %p1166_p1, %p1154_p7  ;;  %p1174_p10 = scmp.lt.s32.totalorder %s1172_s25, %s1165_s29 }
  0x50   : > { %p1169_p2 = pneg %p1168_p6  ;;  %p1175_p4 = por %p1174_p10, %p1173_p9 }
  0x52   : > { %p1176_p8 = pnand %p1175_p4, %p1169_p2 }
  0x54   : > { %1179 = shalt.err (!%p1176_p8)
}
  0x55   : > { %1029 = dma.hbm_to_vmem [thread:$0]  (!%p1410_p11), %s1408_s10, 256, %s1414_s12, %s1416_s14, %s1256_s7, %s1256_s7, %s1257_s8  }
  0x56   : > { %p1594_p1 = scmp.ne.s32.totalorder %s1590_s23, 0 }
  0x57   : > { %s1443_s20 = sand.u32 (!%p1594_p1), 1, %s1244_s16   ;;  %p1595_p4 = scmp.ne.s32.totalorder (!%p1594_p1), %s1588_s21, 0 }
  0x58   : > { %215 = sbr.rel (%p1594_p1) target bundleno = 355 (0x163), region = 36  ;;  %s859_s27 = sshll.u32 (!%p1594_p1), %s1443_s20, 4 }
  0x59   : > { %s218_s30 = scalar_lea.sflag (!%p1594_p1), [#allocation3], %s1443_s20  ;;  %s1449_s13 = scalar_lea.vmem (!%p1594_p1), [#allocation2], %s859_s27 }
  0x5d   : > { %1223 = dma.done.wait (%p1595_p4), %s218_s30, 256  }
  0x5e   : > { %1225 = vsyncadd (%p1595_p4), %s218_s30, 4294967040  ;;  %p1596_p6 = scmp.eq.s32.totalorder %s1313_s19, 0 }
  0x60   : > { %1227 = dma.done.wait (%p1596_p6), [#allocation7], 4096   ;;  %p1597_p8 = pmov %p1596_p6 }
  0x61   : > { %p1598_p10 = pmov %p1596_p6 }
  0x62   : > { %1229 = vsyncadd (%p1597_p8), [#allocation7], 4294963200 }
  0x63   : > { %1231 = dma.done.wait (%p1598_p10), [#allocation5], 16   ;;  %p1599_p11 = pmov %p1596_p6 }
  0x65   : > { %1233 = vsyncadd (%p1599_p11), [#allocation5], 4294967280 }
  0x66   : > { %238 = sfence }
  0x67   : > { %v286_v0 = vld [vmem:[#allocation6 + $0x78] sm:$0xff]  ;;  %v285_v2 = vld [vmem:[#allocation6 + $0x70] sm:$0xff]  ;;  %v284_v4 = vld [vmem:[#allocation6 + $0x68] sm:$0xff]  ;;  %vm263_vm0 = vcmask 1040384   ;;  %v639_v20 = vlaneseq  ;;  %vm287_vm1 = vcmask 523264   ;;  %vm457_vm3 = vcmask 1046528  }
  0x68   : > { %v277_v1 = vld [vmem:[#allocation6 + $0x38] sm:$0xff]  ;;  %924 = vmatprep.subr.mxu0 %v286_v0  ;;  %v276_v3 = vld [vmem:[#allocation6 + $0x30] sm:$0xff]  ;;  %v275_v5 = vld [vmem:[#allocation6 + $0x28] sm:$0xff]  ;;  %v1260_v33 = vmov 0.0   ;;  %s1261_s21 = smov 4   ;;  %s1262_s23 = smov 124  }
  0x69   : > { %943 = vmatprep.subr.mxu1 %v277_v1  ;;  %925 = vmatpush3.msra.mxu0 %v286_v0  ;;  %v283_v6 = vld [vmem:[#allocation6 + $0x60] sm:$0xff]  ;;  %v282_v8 = vld [vmem:[#allocation6 + $0x58] sm:$0xff]  ;;  %v281_v11 = vld [vmem:[#allocation6 + $0x50] sm:$0xff]  ;;  %v1476_v23 = vshrl.u32 %v639_v20, 7  ;;  %v461_v34 = vrot.slane %v1260_v33, 1  ;;  %v643_v59 = vand.u32 127, %v639_v20 }
  0x6a   : > { %944 = vmatpush3.msra.mxu1 %v277_v1  ;;  %926 = vmatprep.subr.mxu0 %v285_v2  ;;  %v274_v7 = vld [vmem:[#allocation6 + $0x20] sm:$0xff]  ;;  %v273_v9 = vld [vmem:[#allocation6 + $0x18] sm:$0xff]  ;;  %v272_v12 = vld [vmem:[#allocation6 + $0x10] sm:$0xff]  ;;  %s668_s7 = sld [smem:[#allocation9]]  ;;  %vm702_vm13 = vcmask 31744   ;;  %s883_s10 = sshll.u32 %s1313_s19, 8 }
  0x6b   : > { %945 = vmatprep.subr.mxu1 %v276_v3  ;;  %927 = vmatpush3.msra.mxu0 %v285_v2  ;;  %v1464_v10 = vld [vmem:[%s1449_s13] sm:$0xff]  ;;  %v1467_v13 = vld [vmem:[%s1449_s13 + $0x8] sm:$0xff]  ;;  %vm644_vm2 = vcmp.eq.s32.totalorder %v1476_v23, 0  ;;  %v1485_v28 = vadd.s32 8, %v1476_v23  ;;  %vm648_vm5 = vcmp.lt.s32.totalorder %v643_v59, 4  ;;  %vm649_vm6 = vcmp.ge.s32.totalorder %v643_v59, 60  ;;  %s1532_s29 = scalar_lea.hbm %s1583_s4, %s883_s10 }
  0x6c   : > { %946 = vmatpush3.msra.mxu1 %v276_v3  ;;  %928 = vmatprep.subr.mxu0 %v284_v4  ;;  %v280_v14 = vld [vmem:[#allocation6 + $0x48] sm:$0xff]  ;;  %v264_v16 = vrot.slane %v1464_v10, 7  ;;  %v265_v17 = vrot.slane %v1467_v13, 7  ;;  %v279_v18 = vld [vmem:[#allocation6 + $0x40] sm:$0xff]  ;;  %v455_v24 = vld [vmem:[#allocation6 + $0xb8] sm:$0xff]  ;;  %v459_v31 = vrot.slane %v1467_v13, 1 }
  0x6d   : > { %947 = vmatprep.subr.mxu1 %v275_v5  ;;  %929 = vmatpush3.msra.mxu0 %v284_v4  ;;  %v271_v15 = vld [vmem:[#allocation6 + $0x8] sm:$0xff]  ;;  %v270_v19 = vld [vmem:[#allocation6] sm:$0xff]  ;;  %v557_v25 = vld [vmem:[#allocation8 + $0x38] sm:$0xff]  ;;  %v458_v32 = vrot.slane %v1464_v10, 1  ;;  %vm647_vm4 = vcmp.eq.s32.totalorder %v1485_v28, 15  ;;  %v872_v60 = vsel %vm644_vm2, 1.0, %v1260_v33 }
  0x6e   : > { %948 = vmatpush3.msra.mxu1 %v275_v5  ;;  %930 = vmatprep.subr.mxu0 %v283_v6  ;;  %v269_v21 = vsel %vm263_vm0, 0.0, %v264_v16  ;;  %v1471_v22 = vsel %vm263_vm0, %v264_v16, %v265_v17  ;;  %v454_v26 = vld [vmem:[#allocation6 + $0xb0] sm:$0xff]  ;;  %v453_v29 = vld [vmem:[#allocation6 + $0xa8] sm:$0xff]  ;;  %v452_v35 = vld [vmem:[#allocation6 + $0xa0] sm:$0xff]  ;;  %v462_v41 = vsel %vm457_vm3, %v459_v31, %v461_v34  ;;  %v874_v61 = vsel %vm648_vm5, 1.0, %v1260_v33  ;;  %s1522_s8 = sld [smem:[#allocation9 + $0x1]] }
  0x6f   : > { %949 = vmatprep.subr.mxu1 %v274_v7  ;;  %931 = vmatpush3.msra.mxu0 %v283_v6  ;;  %v556_v27 = vld [vmem:[#allocation8 + $0x30] sm:$0xff]  ;;  %v555_v30 = vld [vmem:[#allocation8 + $0x28] sm:$0xff]  ;;  %v554_v36 = vld [vmem:[#allocation8 + $0x20] sm:$0xff]  ;;  %v686_v37 = vsel %vm644_vm2, -inf, %v269_v21  ;;  %v460_v40 = vsel %vm457_vm3, %v458_v32, %v459_v31  ;;  %v544_v45 = vadd.f32 %v269_v21, %v1464_v10  ;;  %v689_v46 = vsel %vm647_vm4, -inf, %v462_v41  ;;  %s258_s12 = scalar_lea.vmem [#allocation10], %s859_s27 }
  0x70   : > { %950 = vmatpush3.msra.mxu1 %v274_v7  ;;  %932 = vmatprep.subr.mxu0 %v282_v8  ;;  %v451_v38 = vld [vmem:[#allocation6 + $0x98] sm:$0xff]  ;;  %v450_v42 = vld [vmem:[#allocation6 + $0x90] sm:$0xff]  ;;  %v690_v44 = vmax.f32 %v686_v37, %v460_v40  ;;  %v545_v47 = vadd.f32 %v1471_v22, %v1467_v13  ;;  %v449_v48 = vld [vmem:[#allocation6 + $0x88] sm:$0xff]  ;;  %v691_v50 = vmax.f32 %v1471_v22, %v689_v46  ;;  %v664_v62 = vsub.f32 3.0, %v874_v61  ;;  %s745_s14 = sshll.u32 %s258_s12, 4  ;;  %s732_s19 = scalar_lea.sflag [#allocation4], %s1443_s20  ;;  %s1534_s14 = int_to_ptr.vmem [resolvable:$true] %s745_s14 }
  0x71   : > { %951 = vmatprep.subr.mxu1 %v273_v9  ;;  %933 = vmatpush3.msra.mxu0 %v282_v8  ;;  %v553_v39 = vld [vmem:[#allocation8 + $0x18] sm:$0xff]  ;;  %v552_v43 = vld [vmem:[#allocation8 + $0x10] sm:$0xff]  ;;  %v551_v49 = vld [vmem:[#allocation8 + $0x8] sm:$0xff]  ;;  %v548_v54 = vadd.f32 %v544_v45, %v460_v40  ;;  %v875_v63 = vsel %vm649_vm6, 1.0, %v1260_v33  ;;  %v654_v0 = vsub.f32 3.0, %v872_v60  ;;  %v873_v8 = vsel %vm647_vm4, 1.0, %v1260_v33 }
  0x72   : > { %952 = vmatpush3.msra.mxu1 %v273_v9  ;;  %934 = vmatprep.subr.mxu0 %v281_v11  ;;  %v448_v51 = vld [vmem:[#allocation6 + $0x80] sm:$0xff]  ;;  %v1502_v53 = vmax.f32 %v1464_v10, %v690_v44  ;;  %v549_v55 = vadd.f32 %v545_v47, %v462_v41  ;;  %v693_v57 = vmax.f32 %v1467_v13, %v691_v50  ;;  %v1263_v2 = vmov 0.33333334   ;;  %s1180_s9 = scalar_lea.vmem %s1534_s14, 256  ;;  %p1600_p12 = scmp.ne.s32.totalorder %s1592_s28, 0 }
  0x73   : > { %953 = vmatprep.subr.mxu1 %v272_v12  ;;  %935 = vmatpush3.msra.mxu0 %v281_v11  ;;  %v550_v52 = vld [vmem:[#allocation8] sm:$0xff]  ;;  %v667_v1 = vsub.f32 %v664_v62, %v875_v63  ;;  %vm671_vm9 = vcmp.eq.f32.partialorder %v654_v0, 1.0  ;;  %vm669_vm10 = vcmp.eq.f32.partialorder %v654_v0, 2.0  ;;  %v661_v9 = vsub.f32 3.0, %v873_v8  ;;  %p1181_p7 = scmp.ne.s32.totalorder %s1534_s14, %s1180_s9  ;;  %s1264_s11 = smov [#allocation10]  }
  0x74   : > { %954 = vmatpush3.msra.mxu1 %v272_v12  ;;  %936 = vmatprep.subr.mxu0 %v280_v14  ;;  %v705_v56 = vsel %vm287_vm1, %v1502_v53, -inf  ;;  %v706_v58 = vsel %vm287_vm1, %v693_v57, -inf  ;;  %v673_v4 = vsel %vm671_vm9, 1.0, %v1263_v2  ;;  %s1184_s25 = sshll.u32 %s1264_s11, 4  ;;  %s1185_s25 = int_to_ptr.vmem [resolvable:$false] %s1184_s25 }
  0x75   : > { %955 = vmatprep.subr.mxu1 %v271_v15  ;;  %937 = vmatpush3.msra.mxu0 %v280_v14  ;;  %vm678_vm7 = vcmp.eq.f32.partialorder %v667_v1, 1.0  ;;  %vm677_vm8 = vcmp.eq.f32.partialorder %v667_v1, 2.0  ;;  %v675_v6 = vsel %vm669_vm10, 0.5, %v673_v4  ;;  %vm672_vm11 = vcmp.eq.f32.partialorder %v661_v9, 1.0  ;;  %p1182_p13 = pnand %p1181_p7, %p1600_p12  ;;  %s1186_s27 = scalar_lea.vmem %s1185_s25, 512 }
  0x76   : > { %956 = vmatpush3.msra.mxu1 %v271_v15  ;;  %938 = vmatprep.subr.mxu0 %v279_v18  ;;  %v679_v3 = vsel %vm678_vm7, 1.0, %v1263_v2  ;;  %vm670_vm12 = vcmp.eq.f32.partialorder %v661_v9, 2.0  ;;  %p1187_p5 = scmp.lt.s32.totalorder %s1534_s14, %s1185_s25  ;;  %p1188_p3 = scmp.lt.s32.totalorder %s1186_s27, %s1180_s9 }
  0x77   : > { %957 = vmatprep.subr.mxu1 %v270_v19  ;;  %939 = vmatpush3.msra.mxu0 %v279_v18  ;;  %v680_v5 = vsel %vm677_vm8, 0.5, %v679_v3  ;;  %p1183_p0 = pneg %p1182_p13 }
  0x78   : > { %940 = vmatprep.mubr.msk.f32.mxu0 %vm287_vm1, %v1464_v10  ;;  %958 = vmatpush3.msra.mxu1 %v270_v19  ;;  %v681_v7 = vmul.f32 %v680_v5, %v675_v6  ;;  %p1189_p2 = por %p1188_p3, %p1187_p5 }
  0x79   : > { %959 = vmatprep.mubr.msk.f32.mxu1 %vm287_vm1, %v269_v21  ;;  %941 = vmatmul.mubr.msk.f32.vlgmr.msra.gmra.mxu0 %vm287_vm1, %v1467_v13  ;;  %v674_v13 = vsel %vm672_vm11, 1.0, %v1263_v2 }
  0x7a   : > { %960 = vmatmul.mubr.msk.f32.vlgmr.msra.gmra.mxu1 %vm287_vm1, %v1471_v22  ;;  %962 = vmatprep.subr.mxu0 %v455_v24  ;;  %v676_v16 = vsel %vm670_vm12, 0.5, %v674_v13  ;;  %v683_v22 = vstv %s668_s7  ;;  %p1190_p9 = pnand %p1189_p2, %p1183_p0 }
  0x7b   : > { %981 = vmatprep.subr.mxu1 %v557_v25  ;;  %963 = vmatpush3.msra.mxu0 %v455_v24  ;;  %v682_v19 = vmul.f32 %v680_v5, %v676_v16 }
  0x7c   : > { %982 = vmatpush3.msra.mxu1 %v557_v25  ;;  %964 = vmatprep.subr.mxu0 %v454_v26 }
  0x7d   : > { %983 = vmatprep.subr.mxu1 %v556_v27  ;;  %965 = vmatpush3.msra.mxu0 %v454_v26  ;;  %v685_v25 = vmul.f32 %v683_v22, %v682_v19 }
  0x7e   : > { %984 = vmatpush3.msra.mxu1 %v556_v27  ;;  %966 = vmatprep.subr.mxu0 %v453_v29 }
  0x7f   : > { %985 = vmatprep.subr.mxu1 %v555_v30  ;;  %967 = vmatpush3.msra.mxu0 %v453_v29  ;;  %v684_v29 = vmul.f32 %v683_v22, %v681_v7 }
  0x80   : > { %986 = vmatpush3.msra.mxu1 %v555_v30  ;;  %968 = vmatprep.subr.mxu0 %v452_v35  ;;  %v724_v30 = vstv %s1522_s8 }
  0x81   : > { %987 = vmatprep.subr.mxu1 %v554_v36  ;;  %969 = vmatpush3.msra.mxu0 %v452_v35 }
  0x82   : > { %988 = vmatpush3.msra.mxu1 %v554_v36  ;;  %970 = vmatprep.subr.mxu0 %v451_v38 }
  0x83   : > { %989 = vmatprep.subr.mxu1 %v553_v39  ;;  %971 = vmatpush3.msra.mxu0 %v451_v38 }
  0x84   : > { %990 = vmatpush3.msra.mxu1 %v553_v39  ;;  %972 = vmatprep.subr.mxu0 %v450_v42 }
  0x85   : > { %991 = vmatprep.subr.mxu1 %v552_v43  ;;  %973 = vmatpush3.msra.mxu0 %v450_v42 }
  0x86   : > { %992 = vmatpush3.msra.mxu1 %v552_v43  ;;  %974 = vmatprep.subr.mxu0 %v449_v48 }
  0x87   : > { %993 = vmatprep.subr.mxu1 %v551_v49  ;;  %975 = vmatpush3.msra.mxu0 %v449_v48 }
  0x88   : > { %994 = vmatpush3.msra.mxu1 %v551_v49  ;;  %976 = vmatprep.subr.mxu0 %v448_v51 }
  0x89   : > { %995 = vmatprep.subr.mxu1 %v550_v52  ;;  %977 = vmatpush3.msra.mxu0 %v448_v51 }
  0x8a   : > { %978 = vmatprep.mubr.msk.f32.mxu0 %vm287_vm1, %v460_v40  ;;  %996 = vmatpush3.msra.mxu1 %v550_v52 }
  0x8b   : > { %997 = vmatprep.mubr.msk.f32.mxu1 %vm287_vm1, %v548_v54  ;;  %979 = vmatmul.mubr.msk.f32.vlgmr.msra.gmra.mxu0 %vm287_vm1, %v462_v41 }
  0x8c   : > { %998 = vmatmul.mubr.msk.f32.vlgmr.msra.gmra.mxu1 %vm287_vm1, %v549_v55  ;;  %696 = vrot.lane.b32.xlu0 %v1502_v53, %s1261_s21 }
  0x8d   : > { %709 = vrot.lane.b32.xlu1 %v705_v56, %s1262_s23 }
  0x90   : > { %698 = vrot.lane.b32.xlu0 %v693_v57, %s1261_s21 }
  0x91   : > { %711 = vrot.lane.b32.xlu1 %v706_v58, %s1262_s23 }
  0xfe   : > { %v697_v10 = vpop.permute.xlu0 %696 }
  0xff   : > { %v710_v11 = vpop.permute.xlu1 %709  ;;  %v703_v17 = vsel %vm702_vm13, -inf, %v697_v10 }
 0x100   : > { %v715_v23 = vmax.f32 %v703_v17, %v710_v11 }
 0x102   : > { %v699_v12 = vpop.permute.xlu0 %698  ;;  %v717_v31 = vmax.f32 %v1502_v53, %v715_v23 }
 0x103   : > { %v704_v14 = vsel %vm702_vm13, -inf, %v699_v12  ;;  %v712_v15 = vpop.permute.xlu1 %711 }
 0x104   : > { %v716_v18 = vmax.f32 %v704_v14, %v712_v15  ;;  %v725_v43 = vmul.f32 %v724_v30, %v717_v31 }
 0x106   : > { %v718_v24 = vmax.f32 %v693_v57, %v716_v18 }
 0x108   : > { %v726_v35 = vmul.f32 %v724_v30, %v718_v24 }
 0x139   : > { %v942_v20 = vpop.f32.mrf.mxu0 }
 0x13a   : > { %v961_v21 = vpop.f32.mrf.mxu1 }
 0x13b   : > { %v358_v26 = vpop.f32.mrf.mxu0  ;;  %v444_v28 = vadd.f32 %v961_v21, %v942_v20 }
 0x13c   : > { %v438_v27 = vpop.f32.mrf.mxu1 }
 0x13d   : > { %v439_v34 = vadd.f32 %v438_v27, %v358_v26 }
 0x14b   : > { %v980_v32 = vpop.f32.mrf.mxu0 }
 0x14c   : > { %v999_v33 = vpop.f32.mrf.mxu1  ;;  %v543_v36 = vadd.f32 %v980_v32, %v444_v28 }
 0x14d   : > { %v720_v37 = vmul.f32 %v999_v33, %v685_v25  ;;  %v533_v38 = vpop.f32.mrf.mxu0 }
 0x14e   : > { %v630_v39 = vpop.f32.mrf.mxu1  ;;  %v542_v41 = vadd.f32 %v533_v38, %v439_v34 }
 0x14f   : > { %v722_v40 = vadd.f32 %v720_v37, %v543_v36  ;;  %v719_v42 = vmul.f32 %v684_v29, %v630_v39 }
 0x151   : > { %v728_v44 = vadd.f32 %v726_v35, %v722_v40  ;;  %v721_v45 = vadd.f32 %v719_v42, %v542_v41 }
 0x153   : > { %730 = vst.msk [vmem:[%s258_s12 + $0x8] sm:$0xff] %vm287_vm1, %v728_v44  ;;  %v727_v46 = vadd.f32 %v725_v43, %v721_v45 }
 0x155   : > { %729 = vst.msk [vmem:[%s258_s12] sm:$0xff] %vm287_vm1, %v727_v46 }
 0x156   : > { %1193 = shalt.err (!%p1190_p9)
}
 0x157   : > { %s1194_s30 = scalar_lea.hbm %s1532_s29, 256  ;;  %s1198_s23 = scalar_lea.hbm %s1583_s4, 512 }
 0x158   : > { %p1195_p1 = scmp.ne.s32.totalorder %s1532_s29, %s1194_s30  ;;  %p1199_p8 = scmp.lt.s32.totalorder %s1532_s29, %s1583_s4 }
 0x159   : > { %p1200_p10 = scmp.lt.s32.totalorder %s1198_s23, %s1194_s30 }
 0x15a   : > { %p1196_p4 = pnand %p1195_p1, %p1600_p12 }
 0x15b   : > { %p1201_p11 = por %p1200_p10, %p1199_p8 }
 0x15c   : > { %p1197_p6 = pneg %p1196_p4 }
 0x15e   : > { %p1202_p7 = pnand %p1201_p11, %p1197_p6 }
 0x160   : > { %1205 = shalt.err (!%p1202_p7)
}
 0x161   : > { %s1265_s10 = smov 128   ;;  %s1266_s12 = smov 8  }
 0x162   : > { %1014 = dma.vmem_to_hbm [thread:$0]  (%p1600_p12), %s1534_s14, 256, %s1532_s29, %s732_s19, %s1265_s10, %s1265_s10, %s1266_s12  }
 0x163 PF: > { %s760_s5 = sand.u32 1, %s1240_s15   ;;  %p1601_p13 = scmp.ne.s32.totalorder %s1589_s22, 0 }
 0x164   : > { %p1602_p0 = scmp.ge.s32.totalorder %s1252_s18, 2  ;;  %s761_s6 = scalar_lea.sflag [#allocation4], %s760_s5 }
 0x166   : > { %p1031_p5 = pnand %p1602_p0, %p1601_p13 }
 0x168   : > { %p1032_p3 = pneg %p1031_p5 }
 0x16a   : > { %1235 = dma.done.wait (%p1032_p3), %s761_s6, 256  }
 0x16b   : > { %1237 = vsyncadd (%p1032_p3), %s761_s6, 4294967040  ;;  %p19_p2 = scmp.ge.s32.totalorder %s1385_s24, 4   ;;  %s1603_s15 = smov %s1244_s16 }
 0x16c   : > { %s1604_s16 = smov %s1248_s17  ;;  %s1605_s17 = smov %s1395_s26 }
 0x16d   : > { %s1606_s18 = smov %s1385_s24  ;;  %21 = sbr.rel (!%p19_p2) target bundleno = 7 (0x7), region = 96 }
 0x172   :  { %766 = vsyncpa [#allocation3], 1 }
 0x173   :  { %768 = vsyncpa [#allocation3 + $0x1], 1 }
 0x174   :  { %769 = vsyncpa [#allocation7], 1 }
 0x175   :  { %770 = vsyncpa [#allocation4], 1 }
 0x176   :  { %772 = vsyncpa [#allocation4 + $0x1], 1 }
 0x177   :  { %773 = vsyncpa [#allocation5], 1 }
 0x178   :  { %775 = vsyncpa [#allocation5 + $0x1], 1 }

</bundles_post_ra>
